<compile_context>
chip_gen: v5e
topology: v5e:2x2
jax: 0.10.0
libtpu: 0.0.40
codegen_flags: <defaults>
</compile_context>

<pallas_src>
from functools import partial

import jax
import jax.numpy as jnp
from jax.experimental import pallas as pl
from jax.experimental.pallas import tpu as pltpu


def _inplace_update_kernel(a_ref, b_ref, a_out_ref, pair_ref):
    b = b_ref[...]                       # load b once, reuse for all outputs
    a_out_ref[...] = a_ref[...] - b      # the in-place `a.sub_(b)` (aliased to input a)
    # (b - 1, b + 1) stacked along sublanes -> a single coalesced store / one DMA.
    pair_ref[...] = jnp.concatenate([b - 1.0, b + 1.0], axis=0)


@partial(jax.jit, donate_argnums=(0,))
def module_inplace_update(a, b):
    """a, b: (N,) float32.  Returns (a_new, b - 1, b + 1).

    `a_new` plays the role of the in-place-updated `a`; its buffer is aliased
    to (and donated from) the caller's `a`, reproducing torch's a.sub_(b)
    memory behavior as closely as functional JAX allows.
    """
    orig_shape = a.shape
    n = a.size
    # Guarded casts only (inputs are already f32 in this module's spec).
    if a.dtype != jnp.float32:
        a = a.astype(jnp.float32)
    if b.dtype != jnp.float32:
        b = b.astype(jnp.float32)

    a2 = a.reshape(1, n)   # (sublane, lane) 2-D layout for TPU; bitcast under jit
    b2 = b.reshape(1, n)

    vmem = pl.BlockSpec(memory_space=pltpu.MemorySpace.VMEM)
    a_new, pair = pl.pallas_call(
        _inplace_update_kernel,
        out_shape=(
            jax.ShapeDtypeStruct((1, n), jnp.float32),   # a_new (aliased to a)
            jax.ShapeDtypeStruct((2, n), jnp.float32),   # [b - 1 ; b + 1]
        ),
        in_specs=[vmem, vmem],
        out_specs=(vmem, vmem),
        # Model the PyTorch in-place mutation: output 0 reuses input 0's buffer.
        input_output_aliases={0: 0},
    )(a2, b2)

    return (a_new.reshape(orig_shape),
            pair[0].reshape(orig_shape),
            pair[1].reshape(orig_shape))


if __name__ == "__main__":
    key = jax.random.PRNGKey(0)
    ka, kb = jax.random.split(key, 2)

    # get_random_inputs(): torch.randn(10), torch.randn(10)
    a = jax.random.normal(ka, (10,), dtype=jnp.float32)
    b = jax.random.normal(kb, (10,), dtype=jnp.float32)

    # Compute the pure-JAX reference BEFORE the call: `a` is donated by the
    # jitted wrapper (it is the "in-place" argument) and must not be read after.
    ref_a, ref_sub, ref_add = a - b, b - 1.0, b + 1.0
    ref_a, ref_sub, ref_add = jax.block_until_ready((ref_a, ref_sub, ref_add))

    a_new, b_sub, b_add = module_inplace_update(a, b)
    a_new, b_sub, b_add = jax.block_until_ready((a_new, b_sub, b_add))

    assert a_new.shape == (10,) and b_sub.shape == (10,) and b_add.shape == (10,)
    assert jnp.allclose(a_new, ref_a, rtol=1e-6, atol=1e-6), "a.sub_(b) mismatch"
    assert jnp.allclose(b_sub, ref_sub, rtol=1e-6, atol=1e-6), "b - 1 mismatch"
    assert jnp.allclose(b_add, ref_add, rtol=1e-6, atol=1e-6), "b + 1 mismatch"
    print("KERNEL_OK")
</pallas_src>

<mosaic_0001>
module attributes {stable_mosaic.version = 11 : i64} {
  func.func @_inplace_update_kernel(%arg0: memref<1x10xf32, #tpu.memory_space<vmem>>, %arg1: memref<1x10xf32, #tpu.memory_space<vmem>>, %arg2: memref<1x10xf32, #tpu.memory_space<vmem>>, %arg3: memref<2x10xf32, #tpu.memory_space<vmem>>) attributes {dimension_semantics = [], scalar_prefetch = 0 : i64, scratch_operands = 0 : i64, tpu.core_type = #tpu.core_type<tc>} {
    %c0 = arith.constant 0 : index
    %c0_0 = arith.constant 0 : index
    %0 = vector.load %arg1[%c0, %c0_0] : memref<1x10xf32, #tpu.memory_space<vmem>>, vector<1x10xf32>
    %c0_1 = arith.constant 0 : index
    %c0_2 = arith.constant 0 : index
    %1 = vector.load %arg0[%c0_1, %c0_2] : memref<1x10xf32, #tpu.memory_space<vmem>>, vector<1x10xf32>
    %2 = arith.subf %1, %0 : vector<1x10xf32>
    %c0_3 = arith.constant 0 : index
    %c0_4 = arith.constant 0 : index
    %3 = vector.load %arg2[%c0_3, %c0_4] : memref<1x10xf32, #tpu.memory_space<vmem>>, vector<1x10xf32>
    tpu.vector_store %arg2[%c0_3, %c0_4], %2 {strides = array<i32>} : memref<1x10xf32, #tpu.memory_space<vmem>>, vector<1x10xf32>,
    %cst = arith.constant 1.000000e+00 : f32
    %4 = vector.broadcast %cst : f32 to vector<1x10xf32>
    %5 = arith.subf %0, %4 : vector<1x10xf32>
    %cst_5 = arith.constant 1.000000e+00 : f32
    %6 = vector.broadcast %cst_5 : f32 to vector<1x10xf32>
    %7 = arith.addf %0, %6 : vector<1x10xf32>
    %8 = tpu.concatenate %5, %7 in 0 : vector<1x10xf32>, vector<1x10xf32> -> vector<2x10xf32>
    %c0_6 = arith.constant 0 : index
    %c0_7 = arith.constant 0 : index
    %9 = vector.load %arg3[%c0_6, %c0_7] : memref<2x10xf32, #tpu.memory_space<vmem>>, vector<2x10xf32>
    tpu.vector_store %arg3[%c0_6, %c0_7], %8 {strides = array<i32>} : memref<2x10xf32, #tpu.memory_space<vmem>>, vector<2x10xf32>,
    return
  }
}

</mosaic_0001>

<bundles_post_ra>
// kernel: module_inplace_update.1
= control target key start
LH: loop header
LB: loop body
LE: loop exit
PB: predicated region body
PF: predicated region fallthrough
CT: control target
= control target key end

     0   :  { %vm16_vm0 = vcmask 73728   ;;  %vm23_vm1 = vcmask 1040384   ;;  %vm25_vm2 = vcmask 74752   ;;  %s68_s0 = inlined_call_operand.vmem [shape: f32[1,10], index: 0, kind: input, shape index: {}, may-alias: {0,2}]   ;;  %s69_s1 = inlined_call_operand.vmem [shape: f32[1,10], index: 1, kind: input, shape index: {}]   ;;  %s70_s2 = inlined_call_operand.vmem [shape: f32[1,10], index: 2, kind: output, shape index: {0}, may-alias: {0,2}]   ;;  %s71_s3 = inlined_call_operand.vmem [shape: f32[2,10], index: 3, kind: output, shape index: {1}]  }
   0x1   :  { %v13_v0 = vld [vmem:[%s69_s1] sm:$0x1] }
   0x2   :  { %v14_v1 = vld [vmem:[%s68_s0] sm:$0x1]  ;;  %v35_v3 = vadd.f32 -1.0, %v13_v0  ;;  %v19_v4 = vadd.f32 1.0, %v13_v0 }
   0x3   :  { %v15_v2 = vsub.f32 %v14_v1, %v13_v0 }
   0x4   :  { %v21_v5 = vperm.slane %v19_v4, 0 }
   0x5   :  { %17 = vst.msk [vmem:[%s70_s2] sm:$0x1] %vm16_vm0, %v15_v2 }
   0x6   :  { %v24_v6 = vsel %vm23_vm1, %v35_v3, %v21_v5 }
   0x7   :  { %26 = vst.msk [vmem:[%s71_s3] sm:$0x3] %vm25_vm2, %v24_v6 }

</bundles_post_ra>
